<compile_context>
chip_gen: v6e
topology: v6e:2x2x1
jax: 0.10.0
libtpu: 0.0.40
codegen_flags: <defaults>
</compile_context>

<pallas_src>
import functools

import jax
import jax.numpy as jnp
import numpy as np
from jax import lax
from jax.experimental import pallas as pl
from jax.experimental.pallas import tpu as pltpu


def _round_up(x, m):
    return (x + m - 1) // m * m


def _combined_loss_kernel(pred_ref, target_ref, off_ref, out_ref,
                          bce_acc, loc_acc, cnt_acc,
                          *, W, N_true, scale_factor):
    p = pl.program_id(0)              # split (TensorCore) index
    i = pl.program_id(1)              # inner accumulation step
    n_inner = pl.num_programs(1)

    # ---- reset accumulators at the start of each split's sweep ---------------
    @pl.when(i == 0)
    def _():
        bce_acc[...] = jnp.zeros_like(bce_acc)
        loc_acc[...] = jnp.zeros_like(loc_acc)
        cnt_acc[...] = jnp.zeros_like(cnt_acc)

    pred = pred_ref[...].astype(jnp.float32)        # (TILE_N, HW) logits
    target = target_ref[...].astype(jnp.float32)    # (TILE_N, HW)
    off = off_ref[...].astype(jnp.float32)          # (TILE_N, 2*HW) packed x|y
    TILE_N, HW = pred.shape
    off_x = off[:, :HW]
    off_y = off[:, HW:]

    # Global row ids of this tile; mask rows that are padding past N_true.
    row_ids = lax.broadcasted_iota(jnp.int32, (TILE_N, 1), 0)
    global_row = (p * n_inner + i) * TILE_N + row_ids
    in_range = global_row < N_true                  # (TILE_N, 1) bool

    # MXU row-sum (lane reduction via matmul with ones) -> keeps XLU free for
    # the two argmax reductions below.
    ones_rhs = jnp.ones((HW, 128), jnp.float32)

    def mxu_rowsum(x):                              # (TILE_N, HW) -> (TILE_N, 1)
        return jnp.dot(x, ones_rhs, preferred_element_type=jnp.float32)[:, :1]

    # ---- BCEWithLogits, numerically stable ------------------------------------
    bce = (jnp.maximum(pred, 0.0) - pred * target
           + jnp.log(1.0 + jnp.exp(-jnp.abs(pred))))
    bce_rows = jnp.where(in_range, mxu_rowsum(bce), 0.0)        # (TILE_N, 1)
    bce_tile = jnp.sum(bce_rows, axis=0, keepdims=True)         # (1, 1)

    # ---- argmax over flattened H*W (first occurrence, like torch.max) --------
    col_f = lax.broadcasted_iota(jnp.int32, (1, HW), 1).astype(jnp.float32)

    def first_argmax(x):
        m = jnp.max(x, axis=1, keepdims=True)
        return jnp.min(jnp.where(x == m, col_f, jnp.float32(HW)),
                       axis=1, keepdims=True)

    pred_idx = first_argmax(pred)                    # (TILE_N, 1)
    tgt_idx = first_argmax(target)                   # (TILE_N, 1)

    w_f = jnp.float32(W)
    sf = jnp.float32(scale_factor)
    pred_row = jnp.floor(pred_idx / w_f)
    pred_col = pred_idx - pred_row * w_f
    tgt_row = jnp.floor(tgt_idx / w_f)
    tgt_col = tgt_idx - tgt_row * w_f
    # target offsets = (target peak - predicted peak) * scale_factor
    tgt_off_x = (tgt_col - pred_col) * sf
    tgt_off_y = (tgt_row - pred_row) * sf

    # The reference's clamp/round-trip (pred_y/sf etc.) reproduces pred_idx
    # exactly, so gather the predicted offsets directly at pred_idx via a
    # one-hot + MXU reduction.
    onehot = (col_f == pred_idx).astype(jnp.float32)  # (TILE_N, HW)
    off_at_x = mxu_rowsum(off_x * onehot)             # (TILE_N, 1)
    off_at_y = mxu_rowsum(off_y * onehot)             # (TILE_N, 1)

    # ---- SmoothL1 over valid keypoints (target heatmap sum > 0) --------------
    valid = jnp.logical_and(in_range, mxu_rowsum(target) > 0.0)  # (TILE_N, 1)

    def smooth_l1(d):
        ad = jnp.abs(d)
        return jnp.where(ad < 1.0, 0.5 * d * d, ad - 0.5)

    per_row = smooth_l1(off_at_x - tgt_off_x) + smooth_l1(off_at_y - tgt_off_y)
    loc_tile = jnp.sum(jnp.where(valid, per_row, 0.0), axis=0, keepdims=True)
    cnt_tile = jnp.sum(jnp.where(valid, jnp.float32(2.0), jnp.float32(0.0)),
                       axis=0, keepdims=True)

    bce_acc[...] += bce_tile
    loc_acc[...] += loc_tile
    cnt_acc[...] += cnt_tile

    # ---- finalize: write this split's raw partial sums (lanes 0..2) ----------
    @pl.when(i == n_inner - 1)
    def _():
        lane = lax.broadcasted_iota(jnp.int32, (8, 128), 1)
        b = jnp.broadcast_to(bce_acc[...], (8, 128))
        l = jnp.broadcast_to(loc_acc[...], (8, 128))
        c = jnp.broadcast_to(cnt_acc[...], (8, 128))
        out_ref[...] = jnp.where(lane == 0, b,
                                 jnp.where(lane == 1, l,
                                           jnp.where(lane == 2, c,
                                                     jnp.zeros_like(b))))


def combined_keypoint_loss(pred_scoremaps, pred_offsets, target_heatmaps,
                           loc_weight=0.05):
    B, K, H, W = pred_scoremaps.shape
    N, HW = B * K, H * W

    # Leading 'parallel' axis: sharded across TensorCores on v7x (2 TCs),
    # sequential (and harmless) on single-core v5e/v6e.
    SPLITS = 2

    # Row tile: keep pred + target + 2 offset planes (f32) around <= 4 MiB per
    # buffer set so BlockSpec double-buffering fits default scoped VMEM on every
    # generation (v5e 16 MiB, v6e 32 MiB, v7x 64 MiB physical).
    cap = max(8, ((262144 // max(HW, 1)) // 8) * 8)
    tile_n = int(min(128, cap, _round_up(N, 8)))

    chunk = SPLITS * tile_n
    n_pad = _round_up(N, chunk)
    n_inner = n_pad // chunk

    # Pure reshapes: no dtype cast, no strided channel split (offsets stay
    # packed as (N, 2*HW) and are lane-sliced in-kernel).  Zero-pad rows only
    # when N is ragged; padded rows are masked inside the kernel.
    pred2d = pred_scoremaps.reshape(N, HW)
    tgt2d = target_heatmaps.reshape(N, HW)
    off2d = pred_offsets.reshape(N, 2 * HW)
    if n_pad != N:
        cfg = ((0, n_pad - N), (0, 0))
        pred2d = jnp.pad(pred2d, cfg)
        tgt2d = jnp.pad(tgt2d, cfg)
        off2d = jnp.pad(off2d, cfg)

    kernel = functools.partial(_combined_loss_kernel, W=W, N_true=N,
                               scale_factor=256.0 / 32.0)
    row_map = lambda p, i: (p * n_inner + i, 0)

    out = pl.pallas_call(
        kernel,
        out_shape=jax.ShapeDtypeStruct((SPLITS * 8, 128), jnp.float32),
        grid=(SPLITS, n_inner),
        in_specs=[
            pl.BlockSpec((tile_n, HW), row_map),
            pl.BlockSpec((tile_n, HW), row_map),
            pl.BlockSpec((tile_n, 2 * HW), row_map),
        ],
        out_specs=pl.BlockSpec((8, 128), lambda p, i: (p, 0)),
        scratch_shapes=[
            pltpu.VMEM((1, 1), jnp.float32),   # bce partial sum
            pltpu.VMEM((1, 1), jnp.float32),   # masked SmoothL1 partial sum
            pltpu.VMEM((1, 1), jnp.float32),   # valid-component count
        ],
        compiler_params=pltpu.CompilerParams(
            dimension_semantics=("parallel", "arbitrary")),
    )(pred2d, tgt2d, off2d)

    # Combine the per-split partial sums (tiny XLA ops).
    parts = out.reshape(SPLITS, 8, 128)[:, 0, :]        # (SPLITS, 128)
    bce_sum = jnp.sum(parts[:, 0])
    loc_sum = jnp.sum(parts[:, 1])
    cnt = jnp.sum(parts[:, 2])

    score = bce_sum / jnp.float32(N * HW)
    loc = jnp.where(cnt > 0.0, loc_sum / jnp.maximum(cnt, 1.0), 0.0)
    total = score + jnp.float32(loc_weight) * loc
    return total, score, loc


def reference_loss(pred_scoremaps, pred_offsets, target_heatmaps, loc_weight=0.05):
    """Pure-JAX reference matching the PyTorch forward."""
    B, K, H, W = pred_scoremaps.shape
    x = pred_scoremaps.astype(jnp.float32)
    t = target_heatmaps.astype(jnp.float32)
    bce = jnp.mean(jnp.maximum(x, 0.0) - x * t + jnp.log1p(jnp.exp(-jnp.abs(x))))

    pred_flat = x.reshape(B, K, -1)
    tgt_flat = t.reshape(B, K, -1)
    pred_idx = jnp.argmax(pred_flat, axis=2)
    tgt_idx = jnp.argmax(tgt_flat, axis=2)
    sf = 256.0 / 32.0
    pred_y = (pred_idx // W).astype(jnp.float32) * sf
    pred_x = (pred_idx % W).astype(jnp.float32) * sf
    tgt_y = (tgt_idx // W).astype(jnp.float32) * sf
    tgt_x = (tgt_idx % W).astype(jnp.float32) * sf
    py = jnp.clip((pred_y / sf).astype(jnp.int32), 0, H - 1)
    px = jnp.clip((pred_x / sf).astype(jnp.int32), 0, W - 1)
    b_idx = jnp.arange(B)[:, None]
    k_idx = jnp.arange(K)[None, :]
    off_at = pred_offsets[b_idx, k_idx, :, py, px]            # (B,K,2)
    tgt_off = jnp.stack([tgt_x - pred_x, tgt_y - pred_y], axis=2)
    valid = (tgt_flat.sum(axis=2) > 0)[..., None]             # (B,K,1)
    d = off_at - tgt_off
    sl1 = jnp.where(jnp.abs(d) < 1.0, 0.5 * d * d, jnp.abs(d) - 0.5)
    vmask = jnp.broadcast_to(valid, sl1.shape)
    cnt = jnp.sum(vmask.astype(jnp.float32))
    loc = jnp.where(cnt > 0,
                    jnp.sum(jnp.where(vmask, sl1, 0.0)) / jnp.maximum(cnt, 1.0),
                    0.0)
    total = bce + loc_weight * loc
    return total, bce, loc


if __name__ == "__main__":
    key = jax.random.PRNGKey(0)
    B, K, H, W = 2, 4, 16, 16
    k1, k2, k3 = jax.random.split(key, 3)
    pred_scoremaps = jax.random.normal(k1, (B, K, H, W), jnp.float32)
    pred_offsets = jax.random.normal(k2, (B, K, 2, H, W), jnp.float32)
    target_heatmaps = jax.random.uniform(k3, (B, K, H, W), jnp.float32)
    # Zero one keypoint heatmap to exercise the invalid-keypoint masking path.
    target_heatmaps = target_heatmaps.at[0, 1].set(0.0)

    total, score, loc = combined_keypoint_loss(pred_scoremaps, pred_offsets,
                                               target_heatmaps)
    jax.block_until_ready((total, score, loc))

    ref_total, ref_score, ref_loc = reference_loss(pred_scoremaps, pred_offsets,
                                                   target_heatmaps)
    got = np.array([float(total), float(score), float(loc)])
    want = np.array([float(ref_total), float(ref_score), float(ref_loc)])
    assert np.allclose(got, want, rtol=1e-4, atol=1e-4), (got, want)
    print("KERNEL_OK")
</pallas_src>

<mosaic_0001>
module attributes {stable_mosaic.version = 11 : i64} {
  func.func @_combined_loss_kernel(%arg0: i32, %arg1: i32, %arg2: memref<8x256xf32, #tpu.memory_space<vmem>>, %arg3: memref<8x256xf32, #tpu.memory_space<vmem>>, %arg4: memref<8x512xf32, #tpu.memory_space<vmem>>, %arg5: memref<8x128xf32, #tpu.memory_space<vmem>>, %arg6: memref<1x1xf32, #tpu.memory_space<vmem>>, %arg7: memref<1x1xf32, #tpu.memory_space<vmem>>, %arg8: memref<1x1xf32, #tpu.memory_space<vmem>>) attributes {dimension_semantics = [#tpu.dimension_semantics<parallel>, #tpu.dimension_semantics<arbitrary>], iteration_bounds = array<i64: 2, 1>, scalar_prefetch = 0 : i64, scratch_operands = 3 : i64, tpu.core_type = #tpu.core_type<tc>, window_params = [{transform_indices = @transform_0, window_bounds = array<i64: 8, 256>}, {transform_indices = @transform_1, window_bounds = array<i64: 8, 256>}, {transform_indices = @transform_2, window_bounds = array<i64: 8, 512>}, {transform_indices = @transform_3, window_bounds = array<i64: 8, 128>}]} {
    %c0_i32 = arith.constant 0 : i32
    %0 = arith.cmpi eq, %arg1, %c0_i32 : i32
    %1 = arith.extui %0 : i1 to i32
    %c0_i32_0 = arith.constant 0 : i32
    %2 = arith.cmpi ne, %1, %c0_i32_0 : i32
    scf.if %2 {
      %cst_54 = arith.constant 0.000000e+00 : f32
      %133 = vector.broadcast %cst_54 : f32 to vector<1x1xf32>
      %c0_55 = arith.constant 0 : index
      %c0_56 = arith.constant 0 : index
      %134 = vector.load %arg6[%c0_55, %c0_56] : memref<1x1xf32, #tpu.memory_space<vmem>>, vector<1x1xf32>
      tpu.vector_store %arg6[%c0_55, %c0_56], %133 {strides = array<i32>} : memref<1x1xf32, #tpu.memory_space<vmem>>, vector<1x1xf32>,
      %cst_57 = arith.constant 0.000000e+00 : f32
      %135 = vector.broadcast %cst_57 : f32 to vector<1x1xf32>
      %c0_58 = arith.constant 0 : index
      %c0_59 = arith.constant 0 : index
      %136 = vector.load %arg7[%c0_58, %c0_59] : memref<1x1xf32, #tpu.memory_space<vmem>>, vector<1x1xf32>
      tpu.vector_store %arg7[%c0_58, %c0_59], %135 {strides = array<i32>} : memref<1x1xf32, #tpu.memory_space<vmem>>, vector<1x1xf32>,
      %cst_60 = arith.constant 0.000000e+00 : f32
      %137 = vector.broadcast %cst_60 : f32 to vector<1x1xf32>
      %c0_61 = arith.constant 0 : index
      %c0_62 = arith.constant 0 : index
      %138 = vector.load %arg8[%c0_61, %c0_62] : memref<1x1xf32, #tpu.memory_space<vmem>>, vector<1x1xf32>
      tpu.vector_store %arg8[%c0_61, %c0_62], %137 {strides = array<i32>} : memref<1x1xf32, #tpu.memory_space<vmem>>, vector<1x1xf32>,
    } else {
    }
    %c0 = arith.constant 0 : index
    %c0_1 = arith.constant 0 : index
    %3 = vector.load %arg2[%c0, %c0_1] : memref<8x256xf32, #tpu.memory_space<vmem>>, vector<8x256xf32>
    %c0_2 = arith.constant 0 : index
    %c0_3 = arith.constant 0 : index
    %4 = vector.load %arg3[%c0_2, %c0_3] : memref<8x256xf32, #tpu.memory_space<vmem>>, vector<8x256xf32>
    %c0_4 = arith.constant 0 : index
    %c0_5 = arith.constant 0 : index
    %5 = vector.load %arg4[%c0_4, %c0_5] : memref<8x512xf32, #tpu.memory_space<vmem>>, vector<8x512xf32>
    %6 = vector.extract_strided_slice %5 {offsets = [0, 0], sizes = [8, 256], strides = [1, 1]} : vector<8x512xf32> to vector<8x256xf32>
    %7 = vector.extract_strided_slice %5 {offsets = [0, 256], sizes = [8, 256], strides = [1, 1]} : vector<8x512xf32> to vector<8x256xf32>
    %8 = tpu.iota {dimensions = array<i32: 0>} : vector<8x1xi32>
    %c1_i32 = arith.constant 1 : i32
    %9 = arith.muli %arg0, %c1_i32 : i32
    %10 = arith.addi %9, %arg1 : i32
    %c8_i32 = arith.constant 8 : i32
    %11 = arith.muli %10, %c8_i32 : i32
    %12 = vector.broadcast %11 : i32 to vector<8x1xi32>
    %13 = arith.addi %12, %8 : vector<8x1xi32>
    %c8_i32_6 = arith.constant 8 : i32
    %14 = vector.broadcast %c8_i32_6 : i32 to vector<8x1xi32>
    %15 = arith.cmpi slt, %13, %14 : vector<8x1xi32>
    %cst = arith.constant 1.000000e+00 : f32
    %16 = vector.broadcast %cst : f32 to vector<256x128xf32>
    %cst_7 = arith.constant 0.000000e+00 : f32
    %17 = vector.broadcast %cst_7 : f32 to vector<8x256xf32>
    %18 = arith.maximumf %3, %17 : vector<8x256xf32>
    %19 = arith.mulf %3, %4 : vector<8x256xf32>
    %20 = arith.subf %18, %19 : vector<8x256xf32>
    %21 = math.absf %3 : vector<8x256xf32>
    %cst_8 = arith.constant 0.000000e+00 : f32
    %22 = vector.broadcast %cst_8 : f32 to vector<8x256xf32>
    %23 = arith.subf %22, %21 : vector<8x256xf32>
    %24 = math.exp %23 : vector<8x256xf32>
    %cst_9 = arith.constant 1.000000e+00 : f32
    %25 = vector.broadcast %cst_9 : f32 to vector<8x256xf32>
    %26 = arith.addf %25, %24 : vector<8x256xf32>
    %27 = math.log %26 : vector<8x256xf32>
    %28 = arith.addf %20, %27 : vector<8x256xf32>
    %cst_10 = arith.constant dense<0.000000e+00> : vector<8x128xf32>
    %29 = tpu.matmul %28, %16, %cst_10 {dimension_numbers = #tpu.dot_dimension_numbers<[1], [0], [0], [1], [0, 0, 1, 1], [], []>} : vector<8x256xf32>, vector<256x128xf32>, vector<8x128xf32> -> vector<8x128xf32>
    %30 = vector.extract_strided_slice %29 {offsets = [0, 0], sizes = [8, 1], strides = [1, 1]} : vector<8x128xf32> to vector<8x1xf32>
    %cst_11 = arith.constant 0.000000e+00 : f32
    %31 = vector.broadcast %cst_11 : f32 to vector<8x1xf32>
    %32 = arith.select %15, %30, %31 : vector<8x1xi1>, vector<8x1xf32>
    %cst_12 = arith.constant dense<0.000000e+00> : vector<1xf32>
    %33 = vector.multi_reduction <add>, %32, %cst_12 [0] : vector<8x1xf32> to vector<1xf32>
    %34 = vector.shape_cast %33 : vector<1xf32> to vector<1x1xf32>
    %35 = tpu.iota {dimensions = array<i32: 1>} : vector<1x256xi32>
    %36 = arith.sitofp %35 : vector<1x256xi32> to vector<1x256xf32>
    %cst_13 = arith.constant dense<0xFF800000> : vector<8xf32>
    %37 = vector.multi_reduction <maximumf>, %3, %cst_13 [1] : vector<8x256xf32> to vector<8xf32>
    %38 = vector.shape_cast %37 : vector<8xf32> to vector<8x1xf32>
    %39 = vector.broadcast %38 : vector<8x1xf32> to vector<8x256xf32>
    %40 = arith.cmpf oeq, %3, %39 : vector<8x256xf32>
    %cst_14 = arith.constant 2.560000e+02 : f32
    %41 = vector.shape_cast %36 : vector<1x256xf32> to vector<1x256xf32>
    %42 = vector.broadcast %41 : vector<1x256xf32> to vector<8x256xf32>
    %43 = vector.broadcast %cst_14 : f32 to vector<8x256xf32>
    %44 = arith.select %40, %42, %43 : vector<8x256xi1>, vector<8x256xf32>
    %cst_15 = arith.constant dense<0x7F800000> : vector<8xf32>
    %45 = vector.multi_reduction <minimumf>, %44, %cst_15 [1] : vector<8x256xf32> to vector<8xf32>
    %46 = vector.shape_cast %45 : vector<8xf32> to vector<8x1xf32>
    %cst_16 = arith.constant dense<0xFF800000> : vector<8xf32>
    %47 = vector.multi_reduction <maximumf>, %4, %cst_16 [1] : vector<8x256xf32> to vector<8xf32>
    %48 = vector.shape_cast %47 : vector<8xf32> to vector<8x1xf32>
    %49 = vector.broadcast %48 : vector<8x1xf32> to vector<8x256xf32>
    %50 = arith.cmpf oeq, %4, %49 : vector<8x256xf32>
    %cst_17 = arith.constant 2.560000e+02 : f32
    %51 = vector.shape_cast %36 : vector<1x256xf32> to vector<1x256xf32>
    %52 = vector.broadcast %51 : vector<1x256xf32> to vector<8x256xf32>
    %53 = vector.broadcast %cst_17 : f32 to vector<8x256xf32>
    %54 = arith.select %50, %52, %53 : vector<8x256xi1>, vector<8x256xf32>
    %cst_18 = arith.constant dense<0x7F800000> : vector<8xf32>
    %55 = vector.multi_reduction <minimumf>, %54, %cst_18 [1] : vector<8x256xf32> to vector<8xf32>
    %56 = vector.shape_cast %55 : vector<8xf32> to vector<8x1xf32>
    %cst_19 = arith.constant 1.600000e+01 : f32
    %57 = vector.broadcast %cst_19 : f32 to vector<8x1xf32>
    %58 = arith.divf %46, %57 : vector<8x1xf32>
    %59 = math.floor %58 : vector<8x1xf32>
    %cst_20 = arith.constant 1.600000e+01 : f32
    %60 = vector.broadcast %cst_20 : f32 to vector<8x1xf32>
    %61 = arith.mulf %59, %60 : vector<8x1xf32>
    %62 = arith.subf %46, %61 : vector<8x1xf32>
    %cst_21 = arith.constant 1.600000e+01 : f32
    %63 = vector.broadcast %cst_21 : f32 to vector<8x1xf32>
    %64 = arith.divf %56, %63 : vector<8x1xf32>
    %65 = math.floor %64 : vector<8x1xf32>
    %cst_22 = arith.constant 1.600000e+01 : f32
    %66 = vector.broadcast %cst_22 : f32 to vector<8x1xf32>
    %67 = arith.mulf %65, %66 : vector<8x1xf32>
    %68 = arith.subf %56, %67 : vector<8x1xf32>
    %69 = arith.subf %68, %62 : vector<8x1xf32>
    %cst_23 = arith.constant 8.000000e+00 : f32
    %70 = vector.broadcast %cst_23 : f32 to vector<8x1xf32>
    %71 = arith.mulf %69, %70 : vector<8x1xf32>
    %72 = arith.subf %65, %59 : vector<8x1xf32>
    %cst_24 = arith.constant 8.000000e+00 : f32
    %73 = vector.broadcast %cst_24 : f32 to vector<8x1xf32>
    %74 = arith.mulf %72, %73 : vector<8x1xf32>
    %75 = vector.broadcast %36 : vector<1x256xf32> to vector<8x256xf32>
    %76 = vector.broadcast %46 : vector<8x1xf32> to vector<8x256xf32>
    %77 = arith.cmpf oeq, %75, %76 : vector<8x256xf32>
    %78 = arith.extui %77 : vector<8x256xi1> to vector<8x256xi32>
    %79 = arith.sitofp %78 : vector<8x256xi32> to vector<8x256xf32>
    %80 = arith.mulf %6, %79 : vector<8x256xf32>
    %cst_25 = arith.constant dense<0.000000e+00> : vector<8x128xf32>
    %81 = tpu.matmul %80, %16, %cst_25 {dimension_numbers = #tpu.dot_dimension_numbers<[1], [0], [0], [1], [0, 0, 1, 1], [], []>} : vector<8x256xf32>, vector<256x128xf32>, vector<8x128xf32> -> vector<8x128xf32>
    %82 = vector.extract_strided_slice %81 {offsets = [0, 0], sizes = [8, 1], strides = [1, 1]} : vector<8x128xf32> to vector<8x1xf32>
    %83 = arith.mulf %7, %79 : vector<8x256xf32>
    %cst_26 = arith.constant dense<0.000000e+00> : vector<8x128xf32>
    %84 = tpu.matmul %83, %16, %cst_26 {dimension_numbers = #tpu.dot_dimension_numbers<[1], [0], [0], [1], [0, 0, 1, 1], [], []>} : vector<8x256xf32>, vector<256x128xf32>, vector<8x128xf32> -> vector<8x128xf32>
    %85 = vector.extract_strided_slice %84 {offsets = [0, 0], sizes = [8, 1], strides = [1, 1]} : vector<8x128xf32> to vector<8x1xf32>
    %cst_27 = arith.constant dense<0.000000e+00> : vector<8x128xf32>
    %86 = tpu.matmul %4, %16, %cst_27 {dimension_numbers = #tpu.dot_dimension_numbers<[1], [0], [0], [1], [0, 0, 1, 1], [], []>} : vector<8x256xf32>, vector<256x128xf32>, vector<8x128xf32> -> vector<8x128xf32>
    %87 = vector.extract_strided_slice %86 {offsets = [0, 0], sizes = [8, 1], strides = [1, 1]} : vector<8x128xf32> to vector<8x1xf32>
    %cst_28 = arith.constant 0.000000e+00 : f32
    %88 = vector.broadcast %cst_28 : f32 to vector<8x1xf32>
    %89 = arith.cmpf ogt, %87, %88 : vector<8x1xf32>
    %90 = arith.andi %15, %89 : vector<8x1xi1>
    %91 = arith.subf %82, %71 : vector<8x1xf32>
    %92 = math.absf %91 : vector<8x1xf32>
    %cst_29 = arith.constant 1.000000e+00 : f32
    %93 = vector.broadcast %cst_29 : f32 to vector<8x1xf32>
    %94 = arith.cmpf olt, %92, %93 : vector<8x1xf32>
    %cst_30 = arith.constant 5.000000e-01 : f32
    %95 = vector.broadcast %cst_30 : f32 to vector<8x1xf32>
    %96 = arith.mulf %95, %91 : vector<8x1xf32>
    %97 = arith.mulf %96, %91 : vector<8x1xf32>
    %cst_31 = arith.constant 5.000000e-01 : f32
    %98 = vector.broadcast %cst_31 : f32 to vector<8x1xf32>
    %99 = arith.subf %92, %98 : vector<8x1xf32>
    %100 = arith.select %94, %97, %99 : vector<8x1xi1>, vector<8x1xf32>
    %101 = arith.subf %85, %74 : vector<8x1xf32>
    %102 = math.absf %101 : vector<8x1xf32>
    %cst_32 = arith.constant 1.000000e+00 : f32
    %103 = vector.broadcast %cst_32 : f32 to vector<8x1xf32>
    %104 = arith.cmpf olt, %102, %103 : vector<8x1xf32>
    %cst_33 = arith.constant 5.000000e-01 : f32
    %105 = vector.broadcast %cst_33 : f32 to vector<8x1xf32>
    %106 = arith.mulf %105, %101 : vector<8x1xf32>
    %107 = arith.mulf %106, %101 : vector<8x1xf32>
    %cst_34 = arith.constant 5.000000e-01 : f32
    %108 = vector.broadcast %cst_34 : f32 to vector<8x1xf32>
    %109 = arith.subf %102, %108 : vector<8x1xf32>
    %110 = arith.select %104, %107, %109 : vector<8x1xi1>, vector<8x1xf32>
    %111 = arith.addf %100, %110 : vector<8x1xf32>
    %cst_35 = arith.constant 0.000000e+00 : f32
    %112 = vector.broadcast %cst_35 : f32 to vector<8x1xf32>
    %113 = arith.select %90, %111, %112 : vector<8x1xi1>, vector<8x1xf32>
    %cst_36 = arith.constant dense<0.000000e+00> : vector<1xf32>
    %114 = vector.multi_reduction <add>, %113, %cst_36 [0] : vector<8x1xf32> to vector<1xf32>
    %115 = vector.shape_cast %114 : vector<1xf32> to vector<1x1xf32>
    %cst_37 = arith.constant 2.000000e+00 : f32
    %cst_38 = arith.constant 0.000000e+00 : f32
    %116 = vector.broadcast %cst_37 : f32 to vector<8x1xf32>
    %117 = vector.broadcast %cst_38 : f32 to vector<8x1xf32>
    %118 = arith.select %90, %116, %117 : vector<8x1xi1>, vector<8x1xf32>
    %cst_39 = arith.constant dense<0.000000e+00> : vector<1xf32>
    %119 = vector.multi_reduction <add>, %118, %cst_39 [0] : vector<8x1xf32> to vector<1xf32>
    %120 = vector.shape_cast %119 : vector<1xf32> to vector<1x1xf32>
    %c0_40 = arith.constant 0 : index
    %c0_41 = arith.constant 0 : index
    %121 = vector.load %arg6[%c0_40, %c0_41] : memref<1x1xf32, #tpu.memory_space<vmem>>, vector<1x1xf32>
    %122 = arith.addf %121, %34 : vector<1x1xf32>
    %c0_42 = arith.constant 0 : index
    %c0_43 = arith.constant 0 : index
    %123 = vector.load %arg6[%c0_42, %c0_43] : memref<1x1xf32, #tpu.memory_space<vmem>>, vector<1x1xf32>
    tpu.vector_store %arg6[%c0_42, %c0_43], %122 {strides = array<i32>} : memref<1x1xf32, #tpu.memory_space<vmem>>, vector<1x1xf32>,
    %c0_44 = arith.constant 0 : index
    %c0_45 = arith.constant 0 : index
    %124 = vector.load %arg7[%c0_44, %c0_45] : memref<1x1xf32, #tpu.memory_space<vmem>>, vector<1x1xf32>
    %125 = arith.addf %124, %115 : vector<1x1xf32>
    %c0_46 = arith.constant 0 : index
    %c0_47 = arith.constant 0 : index
    %126 = vector.load %arg7[%c0_46, %c0_47] : memref<1x1xf32, #tpu.memory_space<vmem>>, vector<1x1xf32>
    tpu.vector_store %arg7[%c0_46, %c0_47], %125 {strides = array<i32>} : memref<1x1xf32, #tpu.memory_space<vmem>>, vector<1x1xf32>,
    %c0_48 = arith.constant 0 : index
    %c0_49 = arith.constant 0 : index
    %127 = vector.load %arg8[%c0_48, %c0_49] : memref<1x1xf32, #tpu.memory_space<vmem>>, vector<1x1xf32>
    %128 = arith.addf %127, %120 : vector<1x1xf32>
    %c0_50 = arith.constant 0 : index
    %c0_51 = arith.constant 0 : index
    %129 = vector.load %arg8[%c0_50, %c0_51] : memref<1x1xf32, #tpu.memory_space<vmem>>, vector<1x1xf32>
    tpu.vector_store %arg8[%c0_50, %c0_51], %128 {strides = array<i32>} : memref<1x1xf32, #tpu.memory_space<vmem>>, vector<1x1xf32>,
    %c0_i32_52 = arith.constant 0 : i32
    %130 = arith.cmpi eq, %arg1, %c0_i32_52 : i32
    %131 = arith.extui %130 : i1 to i32
    %c0_i32_53 = arith.constant 0 : i32
    %132 = arith.cmpi ne, %131, %c0_i32_53 : i32
    scf.if %132 {
      %133 = tpu.iota {dimensions = array<i32: 1>} : vector<8x128xi32>
      %c0_54 = arith.constant 0 : index
      %c0_55 = arith.constant 0 : index
      %134 = vector.load %arg6[%c0_54, %c0_55] : memref<1x1xf32, #tpu.memory_space<vmem>>, vector<1x1xf32>
      %135 = vector.shape_cast %134 : vector<1x1xf32> to vector<1x1xf32>
      %136 = vector.broadcast %135 : vector<1x1xf32> to vector<8x128xf32>
      %c0_56 = arith.constant 0 : index
      %c0_57 = arith.constant 0 : index
      %137 = vector.load %arg7[%c0_56, %c0_57] : memref<1x1xf32, #tpu.memory_space<vmem>>, vector<1x1xf32>
      %138 = vector.shape_cast %137 : vector<1x1xf32> to vector<1x1xf32>
      %139 = vector.broadcast %138 : vector<1x1xf32> to vector<8x128xf32>
      %c0_58 = arith.constant 0 : index
      %c0_59 = arith.constant 0 : index
      %140 = vector.load %arg8[%c0_58, %c0_59] : memref<1x1xf32, #tpu.memory_space<vmem>>, vector<1x1xf32>
      %141 = vector.shape_cast %140 : vector<1x1xf32> to vector<1x1xf32>
      %142 = vector.broadcast %141 : vector<1x1xf32> to vector<8x128xf32>
      %c0_i32_60 = arith.constant 0 : i32
      %143 = vector.broadcast %c0_i32_60 : i32 to vector<8x128xi32>
      %144 = arith.cmpi eq, %133, %143 : vector<8x128xi32>
      %c1_i32_61 = arith.constant 1 : i32
      %145 = vector.broadcast %c1_i32_61 : i32 to vector<8x128xi32>
      %146 = arith.cmpi eq, %133, %145 : vector<8x128xi32>
      %c2_i32 = arith.constant 2 : i32
      %147 = vector.broadcast %c2_i32 : i32 to vector<8x128xi32>
      %148 = arith.cmpi eq, %133, %147 : vector<8x128xi32>
      %cst_62 = arith.constant 0.000000e+00 : f32
      %149 = vector.broadcast %cst_62 : f32 to vector<8x128xf32>
      %150 = arith.select %148, %142, %149 : vector<8x128xi1>, vector<8x128xf32>
      %151 = arith.select %146, %139, %150 : vector<8x128xi1>, vector<8x128xf32>
      %152 = arith.select %144, %136, %151 : vector<8x128xi1>, vector<8x128xf32>
      %c0_63 = arith.constant 0 : index
      %c0_64 = arith.constant 0 : index
      %153 = vector.load %arg5[%c0_63, %c0_64] : memref<8x128xf32, #tpu.memory_space<vmem>>, vector<8x128xf32>
      tpu.vector_store %arg5[%c0_63, %c0_64], %152 {strides = array<i32>} : memref<8x128xf32, #tpu.memory_space<vmem>>, vector<8x128xf32>,
    } else {
    }
    return
  }
  func.func @transform_0(%arg0: i32, %arg1: i32) -> (i32, i32) {
    %c1_i32 = arith.constant 1 : i32
    %0 = arith.muli %arg0, %c1_i32 : i32
    %1 = arith.addi %0, %arg1 : i32
    %c0_i32 = arith.constant 0 : i32
    %c0_i32_0 = arith.constant 0 : i32
    return %1, %c0_i32 : i32, i32
  }
  func.func @transform_1(%arg0: i32, %arg1: i32) -> (i32, i32) {
    %c1_i32 = arith.constant 1 : i32
    %0 = arith.muli %arg0, %c1_i32 : i32
    %1 = arith.addi %0, %arg1 : i32
    %c0_i32 = arith.constant 0 : i32
    %c0_i32_0 = arith.constant 0 : i32
    return %1, %c0_i32 : i32, i32
  }
  func.func @transform_2(%arg0: i32, %arg1: i32) -> (i32, i32) {
    %c1_i32 = arith.constant 1 : i32
    %0 = arith.muli %arg0, %c1_i32 : i32
    %1 = arith.addi %0, %arg1 : i32
    %c0_i32 = arith.constant 0 : i32
    %c0_i32_0 = arith.constant 0 : i32
    return %1, %c0_i32 : i32, i32
  }
  func.func @transform_3(%arg0: i32, %arg1: i32) -> (i32, i32) {
    %c0_i32 = arith.constant 0 : i32
    %c0_i32_0 = arith.constant 0 : i32
    return %arg0, %c0_i32 : i32, i32
  }
}

</mosaic_0001>

<bundles_post_ra>
// kernel: tpu_custom_call.1
= control target key start
LH: loop header
LB: loop body
LE: loop exit
PB: predicated region body
PF: predicated region fallthrough
CT: control target
= control target key end

     0   :  { %s1719_s0 = inlined_call_operand.hbm [shape: f32[16,256], index: 0, kind: input, shape index: {}]   ;;  %s1720_s1 = inlined_call_operand.hbm [shape: f32[16,256], index: 1, kind: input, shape index: {}]   ;;  %s1721_s2 = inlined_call_operand.hbm [shape: f32[16,512], index: 2, kind: input, shape index: {}]   ;;  %s1722_s3 = inlined_call_operand.hbm [shape: f32[16,128], index: 3, kind: output, shape index: {}]  }
   0x1   :  { %1724 = sst [smem:[#allocation16_spill]] %s1720_s1 }
   0x2   :  { %8 = vsyncpa [#allocation6], 0 }
   0x3   :  { %10 = vsyncpa [#allocation6 + $0x1], 0 }
   0x4   :  { %11 = vsyncpa [#allocation9], 0 }
   0x5   :  { %13 = vsyncpa [#allocation9 + $0x1], 0 }
   0x6   :  { %14 = vsyncpa [#allocation7], 0 }
   0x7   :  { %16 = vsyncpa [#allocation7 + $0x1], 0  ;;  %s1342_s12 = smov 0   ;;  %s1344_s13 = smov 0  }
   0x8   :  { %s1346_s14 = smov 0   ;;  %s1348_s15 = smov 0  }
   0x9   :  { %s1350_s16 = smov 0   ;;  %s1352_s17 = smov 0  }
   0xa LB: > { %s1373_s18 = sadd.s32 4294967295, %s1313_s17   ;;  %s888_s19 = sadd.s32 4294967294, %s1313_s17   ;;  %s1313_s17 = sphi %s1352_s17, %s22_s17   ;;  %s1309_s16 = sphi %s1350_s16, %s1739_s16   ;;  %s1305_s15 = sphi %s1348_s15, %s1738_s15   ;;  %s1301_s14 = sphi %s1346_s14, %s1737_s14   ;;  %s1297_s13 = sphi %s1344_s13, %s1736_s13   ;;  %s1293_s12 = sphi %s1342_s12, %s1735_s12  }
   0xb   : > { %s34_s20 = sadd.s32 1, %s1309_s16  ;;  %s43_s21 = sadd.s32 1, %s1301_s14 }
   0xc   : > { %p36_p0 = scmp.ge.s32.totalorder %s34_s20, 2  ;;  %p50_p1 = scmp.ne.s32.totalorder %s1301_s14, %s1297_s13 }
   0xd   : > { %p51_p2 = scmp.eq.s32.totalorder %s1313_s17, 0  ;;  %p56_p3 = scmp.ne.s32.totalorder %s1297_s13, %s1293_s12 }
   0xe   : > { %s1741_s20 = smov (%p36_p0, %s34_s20), 0  ;;  %p57_p5 = scmp.eq.s32.totalorder %s1373_s18, 0 }
   0xf   : > { %1725 = sst [smem:[#allocation15_spill]] %s1741_s20  ;;  %p1385_p4 = por %p51_p2, %p50_p1 }
  0x10   : > { %s40_s23 = ssub.s32 %s1309_s16, %s1741_s20  ;;  %p136_p6 = scmp.eq.s32.totalorder %s1373_s18, 1 }
  0x11   : > { %p41_p7 = scmp.eq.s32.totalorder %s40_s23, 0  ;;  %p1393_p8 = por %p57_p5, %p56_p3 }
  0x12   : > { %p1397_p9 = por %p136_p6, %p50_p1  ;;  %p142_p10 = scmp.eq.s32.totalorder %s888_s19, 1 }
  0x13   : > { %s1402_s26 = scalar_select %p41_p7, %s1301_s14, %s43_s21  }
  0x14   : > { %p1404_p11 = por %p142_p10, %p56_p3  ;;  %p1082_p13 = scmp.lt.s32.totalorder %s1313_s17, 2 }
  0x15   : > { %s1411_s28 = sand.u32 1, %s1301_s14   ;;  %s917_s30 = sshll.u32 %s1309_s16, 8 }
  0x16   : > { %s891_s29 = sshll.u32 %s1411_s28, 4  ;;  %p1417_p0 = pnand %p1082_p13, %p1385_p4 }
  0x17   : > { %s182_s5 = sand.u32 1, %s1313_s17   ;;  %s1731_s1 = sld [smem:[#allocation16_spill]] }
  0x18   : > { %s186_s9 = scalar_lea.vmem [#allocation8], %s891_s29  ;;  %p900_p1 = scmp.ge.s32.totalorder %s1313_s17, 1 }
  0x19   : > { %s195_s10 = sshll.u32 %s186_s9, 4  ;;  %p220_p2 = scmp.lt.s32.totalorder %s1313_s17, 3  ;;  %s196_s10 = int_to_ptr.vmem [resolvable:$true] %s195_s10 }
  0x1a   : > { %s1427_s11 = scalar_lea.sflag [#allocation9], %s182_s5  ;;  %p1147_p3 = pneg %p1417_p0 }
  0x1b   : > { %s1158_s19 = scalar_lea.vmem %s196_s10, 256  ;;  %s1315_s21 = smov [#allocation8]  }
  0x1c   : > { %p1159_p4 = scmp.ne.s32.totalorder %s196_s10, %s1158_s19  ;;  %s1163_s22 = sshll.u32 %s1315_s21, 4  ;;  %s1164_s22 = int_to_ptr.vmem [resolvable:$false] %s1163_s22 }
  0x1d   : > { %s193_s8 = scalar_lea.hbm %s1731_s1, %s917_s30  ;;  %s1165_s23 = scalar_lea.vmem %s1164_s22, 512 }
  0x1e   : > { %p1161_p5 = pnand %p1159_p4, %p1147_p3  ;;  %p1166_p7 = scmp.lt.s32.totalorder %s196_s10, %s1164_s22 }
  0x1f   : > { %p1167_p10 = scmp.lt.s32.totalorder %s1165_s23, %s1158_s19 }
  0x20   : > { %p1162_p6 = pneg %p1161_p5 }
  0x21   : > { %p1168_p13 = por %p1167_p10, %p1166_p7 }
  0x23   : > { %p1169_p12 = pnand %p1168_p13, %p1162_p6 }
  0x25   : > { %1172 = shalt.err (!%p1169_p12)
}
  0x26   : > { %1074 = dma.hbm_to_vmem [thread:$0]  (!%p1417_p0), %s193_s8, 256, %s196_s10, %s1427_s11  }
  0x27   : > { %p1441_p4 = pnand %p900_p1, %p220_p2  ;;  %s173_s9 = scalar_lea.hbm %s1719_s0, %s917_s30 }
  0x28   : > { %s166_s19 = scalar_lea.vmem [#allocation5], %s891_s29  ;;  %s897_s22 = sshll.u32 %s1411_s28, 5 }
  0x29   : > { %s175_s21 = sshll.u32 %s166_s19, 4  ;;  %s163_s23 = scalar_lea.sflag [#allocation6], %s1411_s28  ;;  %s176_s21 = int_to_ptr.vmem [resolvable:$true] %s175_s21 }
  0x2a   : > { %s1186_s1 = scalar_lea.vmem %s176_s21, 256  ;;  %s1316_s8 = smov [#allocation5]  }
  0x2b   : > { %p1187_p12 = scmp.ne.s32.totalorder %s176_s21, %s1186_s1  ;;  %s1191_s10 = sshll.u32 %s1316_s8, 4  ;;  %s1192_s10 = int_to_ptr.vmem [resolvable:$false] %s1191_s10 }
  0x2c   : > { %s1193_s20 = scalar_lea.vmem %s1192_s10, 512  ;;  %p1194_p1 = scmp.lt.s32.totalorder %s176_s21, %s1192_s10 }
  0x2d   : > { %p1189_p5 = pnand %p1187_p12, %p1147_p3  ;;  %p1195_p2 = scmp.lt.s32.totalorder %s1193_s20, %s1186_s1 }
  0x2f   : > { %p1190_p6 = pneg %p1189_p5  ;;  %p1196_p7 = por %p1195_p2, %p1194_p1 }
  0x31   : > { %p1197_p10 = pnand %p1196_p7, %p1190_p6 }
  0x33   : > { %1200 = shalt.err (!%p1197_p10)
}
  0x34   : > { %1071 = dma.hbm_to_vmem [thread:$0]  (!%p1417_p0), %s173_s9, 256, %s176_s21, %s163_s23  }
  0x35   : > { %s919_s28 = sshll.u32 %s1309_s16, 9  ;;  %s206_s29 = scalar_lea.vmem [#allocation10], %s897_s22 }
  0x36   : > { %s215_s30 = sshll.u32 %s206_s29, 4  ;;  %s213_s19 = scalar_lea.hbm %s1721_s2, %s919_s28  ;;  %s216_s30 = int_to_ptr.vmem [resolvable:$true] %s215_s30 }
  0x37   : > { %s1214_s8 = scalar_lea.vmem %s216_s30, 512  ;;  %s1317_s1 = smov [#allocation10]  }
  0x38   : > { %p1215_p13 = scmp.ne.s32.totalorder %s216_s30, %s1214_s8  ;;  %s1219_s20 = sshll.u32 %s1317_s1, 4  ;;  %s1220_s20 = int_to_ptr.vmem [resolvable:$false] %s1219_s20 }
  0x39   : > { %s1221_s10 = scalar_lea.vmem %s1220_s20, 1024  ;;  %p1222_p6 = scmp.lt.s32.totalorder %s216_s30, %s1220_s20 }
  0x3a   : > { %p1217_p12 = pnand %p1215_p13, %p1147_p3  ;;  %p1223_p1 = scmp.lt.s32.totalorder %s1221_s10, %s1214_s8 }
  0x3c   : > { %p1218_p5 = pneg %p1217_p12  ;;  %p1224_p2 = por %p1223_p1, %p1222_p6 }
  0x3e   : > { %p1225_p7 = pnand %p1224_p2, %p1218_p5 }
  0x40   : > { %1228 = shalt.err (!%p1225_p7)
}
  0x41   : > { %1077 = dma.hbm_to_vmem [thread:$0]  (!%p1417_p0), %s213_s19, 512, %s216_s30, %s1427_s11  }
  0x42   : > { %224 = sbr.rel (%p1441_p4) target bundleno = 761 (0x2f9), region = 32  ;;  %s1468_s9 = sand.u32 (!%p1441_p4), 1, %s1297_s13  }
  0x43   : > { %s901_s21 = sshll.u32 (!%p1441_p4), %s1468_s9, 4  ;;  %s227_s22 = scalar_lea.sflag (!%p1441_p4), [#allocation6], %s1468_s9 }
  0x44   : > { %s230_s23 = scalar_lea.vmem (!%p1441_p4), [#allocation5], %s901_s21 }
  0x47   : > { %1280 = dma.done.wait (%p1393_p8), %s227_s22, 256  }
  0x48   : > { %1282 = vsyncadd (%p1393_p8), %s227_s22, 4294967040  ;;  %s235_s4 = sand.u32 1, %s1373_s18   ;;  %s239_s5 = scalar_lea.vmem [#allocation8], %s901_s21 }
  0x49   : > { %s236_s11 = scalar_lea.sflag [#allocation9], %s235_s4 }
  0x4a   : > { %1284 = dma.done.wait (%p1393_p8), %s236_s11, 768  }
  0x4b   : > { %1286 = vsyncadd (%p1393_p8), %s236_s11, 4294966528  ;;  %v1481_v0 = vld [vmem:[%s239_s5] sm:$0xff]  ;;  %v1483_v1 = vld [vmem:[%s239_s5 + $0x8] sm:$0xff]  ;;  %v1318_v10 = vmov 1.0   ;;  %v300_v29 = vlaneseq  ;;  %vm288_vm4 = vcmask 0   ;;  %v1319_v42 = vmov 0.0  }
  0x4c   : > { %v1485_v2 = vld [vmem:[%s230_s23] sm:$0xff]  ;;  %v423_v3 = vmax.f32 %v1481_v0, %v1483_v1  ;;  %v1489_v4 = vld [vmem:[%s230_s23 + $0x8] sm:$0xff]  ;;  %920 = vmatprep.subr.mxu0 %v1318_v10  ;;  %955 = vmatprep.subr.mxu1 %v1318_v10  ;;  %289 = vst.msk [vmem:[#allocation2] sm:$0x1] %vm288_vm4, %v1319_v42  ;;  %290 = vst.msk [vmem:[#allocation3] sm:$0x1] %vm288_vm4, %v1319_v42 }
  0x4d   : > { %v413_v5 = vmax.f32 %v1485_v2, %v1489_v4  ;;  %v313_v6 = vand.u32 2147483647, %v1485_v2  ;;  %v314_v9 = vand.u32 2147483647, %v1489_v4  ;;  %921 = vmatpush3.msra.mxu0 %v1318_v10  ;;  %956 = vmatpush3.msra.mxu1 %v1318_v10  ;;  %v307_v17 = vmax.f32 %v1485_v2, 0.0  ;;  %s905_s18 = sshll.u32 %s1305_s15, 3 }
  0x4e   : > { %424 = vmax.xlane.f32.xlu1 %v423_v3  ;;  %922 = vmatprep.subr.mxu0 %v1318_v10  ;;  %v309_v18 = vmul.f32 %v1481_v0, %v1485_v2  ;;  %v308_v20 = vmax.f32 %v1489_v4, 0.0  ;;  %v310_v21 = vmul.f32 %v1483_v1, %v1489_v4  ;;  %v1598_v30 = vand.u32 127, %v300_v29  ;;  %291 = vst.msk [vmem:[#allocation4] sm:$0x1] %vm288_vm4, %v1319_v42  ;;  %s903_s24 = sshll.u32 %s1468_s9, 5  ;;  %s904_s29 = sshll.u32 %s1468_s9, 3 }
  0x4f   : > { %414 = vmax.xlane.f32.xlu0 %v413_v5  ;;  %v315_v7 = vsub.f32 0.0, %v313_v6  ;;  %v316_v11 = vsub.f32 0.0, %v314_v9  ;;  %957 = vmatprep.subr.mxu1 %v1318_v10  ;;  %v301_v43 = vshrl.u32 %v300_v29, 7  ;;  %v304_v44 = vstv %s905_s18  ;;  %s248_s28 = scalar_lea.vmem [#allocation10], %s903_s24  ;;  %s914_s30 = sshll.u32 %s1305_s15, 7 }
  0x50   : > { %923 = vmatpush3.msra.mxu0 %v1318_v10  ;;  %958 = vmatpush3.msra.mxu1 %v1318_v10  ;;  %v311_v22 = vsub.f32 %v307_v17, %v309_v18  ;;  %v312_v24 = vsub.f32 %v308_v20, %v310_v21  ;;  %v410_v31 = vadd.s32 128, %v1598_v30  ;;  %v411_v32 = vcvt.s32.f32 %v1598_v30  ;;  %v297_v60 = vld [vmem:[%s248_s28 + $0x8] sm:$0xff]  ;;  %v299_v61 = vld [vmem:[%s248_s28 + $0x18] sm:$0xff]  ;;  %v296_v62 = vld [vmem:[%s248_s28] sm:$0xff]  ;;  %s280_s6 = scalar_lea.vmem [#allocation11], %s904_s29  ;;  %s1677_s1 = scalar_lea.hbm %s1722_s3, %s914_s30 }
  0x51   : > { %v317_v8 = vmul.f32 1.442695, %v315_v7  ;;  %v319_v12 = vmul.f32 1.442695, %v316_v11  ;;  %924 = vmatprep.subr.mxu0 %v1318_v10  ;;  %959 = vmatprep.subr.mxu1 %v1318_v10  ;;  %v1613_v45 = vadd.s32 %v304_v44, %v301_v43  ;;  %vm400_vm6 = vcmask 7168   ;;  %v298_v63 = vld [vmem:[%s248_s28 + $0x10] sm:$0xff] }
  0x52   : > { %925 = vmatpush3.msra.mxu0 %v1318_v10  ;;  %960 = vmatpush3.msra.mxu1 %v1318_v10  ;;  %v412_v33 = vcvt.s32.f32 %v410_v31  ;;  %vm744_vm13 = vcmp.eq.s32.totalorder %v1598_v30, 2  ;;  %vm743_vm14 = vcmp.eq.s32.totalorder %v1598_v30, 1  ;;  %s763_s7 = sshll.u32 %s280_s6, 4  ;;  %vm742_vm15 = vcmp.eq.s32.totalorder %v1598_v30, 0  ;;  %s750_s20 = scalar_lea.sflag [#allocation7], %s1468_s9  ;;  %s764_s7 = int_to_ptr.vmem [resolvable:$true] %s763_s7 }
  0x53   : > { %1137 = vpow2.f32 %v317_v8  ;;  %926 = vmatprep.subr.mxu0 %v1318_v10  ;;  %961 = vmatprep.subr.mxu1 %v1318_v10  ;;  %vm306_vm5 = vcmp.lt.s32.totalorder %v1613_v45, 8  ;;  %v699_v56 = vld [vmem:[#allocation2] sm:$0x1]  ;;  %v703_v45 = vld [vmem:[#allocation3] sm:$0x1]  ;;  %s1229_s10 = scalar_lea.vmem %s764_s7, 128 }
  0x54   : > { %1139 = vpow2.f32 %v319_v12  ;;  %927 = vmatpush3.msra.mxu0 %v1318_v10  ;;  %962 = vmatpush3.msra.mxu1 %v1318_v10  ;;  %p1230_p8 = scmp.ne.s32.totalorder %s764_s7, %s1229_s10  ;;  %s1321_s15 = smov [#allocation11]  }
  0x55   : > { %928 = vmatprep.subr.mxu0 %v1318_v10  ;;  %963 = vmatprep.subr.mxu1 %v1318_v10  ;;  %s1233_s21 = sshll.u32 %s1321_s15, 4  ;;  %s1234_s21 = int_to_ptr.vmem [resolvable:$false] %s1233_s21 }
  0x56   : > { %929 = vmatpush3.msra.mxu0 %v1318_v10  ;;  %964 = vmatpush3.msra.mxu1 %v1318_v10  ;;  %p1231_p0 = pnand %p1230_p8, %p1397_p9  ;;  %s1235_s22 = scalar_lea.vmem %s1234_s21, 256 }
  0x57   : > { %930 = vmatprep.subr.mxu0 %v1318_v10  ;;  %965 = vmatprep.subr.mxu1 %v1318_v10  ;;  %p1236_p4 = scmp.lt.s32.totalorder %s764_s7, %s1234_s21  ;;  %p1237_p10 = scmp.lt.s32.totalorder %s1235_s22, %s1229_s10 }
  0x58   : > { %931 = vmatpush3.msra.mxu0 %v1318_v10  ;;  %966 = vmatpush3.msra.mxu1 %v1318_v10  ;;  %p1232_p3 = pneg %p1231_p0 }
  0x59   : > { %932 = vmatprep.subr.mxu0 %v1318_v10  ;;  %967 = vmatprep.subr.mxu1 %v1318_v10  ;;  %p1238_p13 = por %p1237_p10, %p1236_p4 }
  0x5a   : > { %933 = vmatpush3.msra.mxu0 %v1318_v10  ;;  %968 = vmatpush3.msra.mxu1 %v1318_v10 }
  0x5b   : > { %934 = vmatprep.subr.mxu0 %v1318_v10  ;;  %969 = vmatprep.subr.mxu1 %v1318_v10  ;;  %p1239_p12 = pnand %p1238_p13, %p1232_p3 }
  0x5c   : > { %935 = vmatpush3.msra.mxu0 %v1318_v10  ;;  %970 = vmatpush3.msra.mxu1 %v1318_v10 }
  0x5d   : > { %936 = vmatprep.subr.mxu0 %v1318_v10  ;;  %971 = vmatprep.subr.mxu1 %v1318_v10 }
  0x5e   : > { %937 = vmatpush3.msra.mxu0 %v1318_v10  ;;  %972 = vmatpush3.msra.mxu1 %v1318_v10 }
  0x5f   : > { %938 = vmatprep.subr.mxu0 %v1318_v10  ;;  %973 = vmatprep.subr.mxu1 %v1318_v10 }
  0x60   : > { %v1138_v13 = vpop.eup %1137  ;;  %939 = vmatpush3.msra.mxu0 %v1318_v10  ;;  %974 = vmatpush3.msra.mxu1 %v1318_v10 }
  0x61   : > { %v321_v14 = vadd.f32 1.0, %v1138_v13  ;;  %v1140_v15 = vpop.eup %1139  ;;  %940 = vmatprep.subr.mxu0 %v1318_v10  ;;  %975 = vmatprep.subr.mxu1 %v1318_v10 }
  0x62   : > { %v322_v16 = vadd.f32 1.0, %v1140_v15  ;;  %941 = vmatpush3.msra.mxu0 %v1318_v10  ;;  %976 = vmatpush3.msra.mxu1 %v1318_v10 }
  0x63   : > { %1141 = vlog2.f32 %v321_v14  ;;  %942 = vmatprep.subr.mxu0 %v1318_v10  ;;  %977 = vmatprep.subr.mxu1 %v1318_v10 }
  0x64   : > { %1143 = vlog2.f32 %v322_v16  ;;  %943 = vmatpush3.msra.mxu0 %v1318_v10  ;;  %978 = vmatpush3.msra.mxu1 %v1318_v10 }
  0x65   : > { %944 = vmatprep.subr.mxu0 %v1318_v10  ;;  %979 = vmatprep.subr.mxu1 %v1318_v10 }
  0x66   : > { %945 = vmatpush3.msra.mxu0 %v1318_v10  ;;  %980 = vmatpush3.msra.mxu1 %v1318_v10 }
  0x67   : > { %946 = vmatprep.subr.mxu0 %v1318_v10  ;;  %981 = vmatprep.subr.mxu1 %v1318_v10 }
  0x68   : > { %947 = vmatpush3.msra.mxu0 %v1318_v10  ;;  %982 = vmatpush3.msra.mxu1 %v1318_v10 }
  0x69   : > { %948 = vmatprep.subr.mxu0 %v1318_v10  ;;  %983 = vmatprep.subr.mxu1 %v1318_v10 }
  0x6a   : > { %949 = vmatpush3.msra.mxu0 %v1318_v10  ;;  %984 = vmatpush3.msra.mxu1 %v1318_v10 }
  0x6b   : > { %950 = vmatprep.subr.mxu0 %v1318_v10  ;;  %985 = vmatprep.subr.mxu1 %v1318_v10 }
  0x6c   : > { %951 = vmatpush3.msra.mxu0 %v1318_v10  ;;  %986 = vmatpush3.msra.mxu1 %v1318_v10 }
  0x6d   : > { %990 = vmatprep.subr.mxu0 %v1318_v10  ;;  %1025 = vmatprep.subr.mxu1 %v1318_v10 }
  0x70   : > { %v1142_v19 = vpop.eup %1141 }
  0x71   : > { %v324_v23 = vmul.f32 0.6931472, %v1142_v19  ;;  %v1144_v25 = vpop.eup %1143 }
  0x72   : > { %v326_v26 = vmul.f32 0.6931472, %v1144_v25 }
  0x73   : > { %v327_v27 = vadd.f32 %v324_v23, %v311_v22 }
  0x74   : > { %v328_v28 = vadd.f32 %v326_v26, %v312_v24 }
  0x76   : > { %393 = vmatprep.mubr.f32.mxu0 %v328_v28 }
  0x77   : > { %394 = vmatmul.mubr.f32.vlgmr.msra.gmra.mxu0 %v327_v27 }
  0x78   : > { %991 = vmatpush3.msra.mxu0 %v1318_v10 }
  0x79   : > { %992 = vmatprep.subr.mxu0 %v1318_v10 }
  0x7a   : > { %993 = vmatpush3.msra.mxu0 %v1318_v10 }
  0x7b   : > { %994 = vmatprep.subr.mxu0 %v1318_v10 }
  0x7c   : > { %995 = vmatpush3.msra.mxu0 %v1318_v10 }
  0x7d   : > { %996 = vmatprep.subr.mxu0 %v1318_v10 }
  0x7e   : > { %997 = vmatpush3.msra.mxu0 %v1318_v10 }
  0x7f   : > { %998 = vmatprep.subr.mxu0 %v1318_v10 }
  0x80   : > { %999 = vmatpush3.msra.mxu0 %v1318_v10 }
  0x81   : > { %1000 = vmatprep.subr.mxu0 %v1318_v10 }
  0x82   : > { %1001 = vmatpush3.msra.mxu0 %v1318_v10 }
  0x83   : > { %1002 = vmatprep.subr.mxu0 %v1318_v10 }
  0x84   : > { %1003 = vmatpush3.msra.mxu0 %v1318_v10 }
  0x85   : > { %1004 = vmatprep.subr.mxu0 %v1318_v10 }
  0x86   : > { %1005 = vmatpush3.msra.mxu0 %v1318_v10 }
  0x87   : > { %1006 = vmatprep.subr.mxu0 %v1318_v10 }
  0x88   : > { %1007 = vmatpush3.msra.mxu0 %v1318_v10 }
  0x89   : > { %1008 = vmatprep.subr.mxu0 %v1318_v10 }
  0x8a   : > { %1009 = vmatpush3.msra.mxu0 %v1318_v10 }
  0x8b   : > { %1010 = vmatprep.subr.mxu0 %v1318_v10 }
  0x8c   : > { %1011 = vmatpush3.msra.mxu0 %v1318_v10 }
  0x8d   : > { %1012 = vmatprep.subr.mxu0 %v1318_v10 }
  0x8e   : > { %1013 = vmatpush3.msra.mxu0 %v1318_v10 }
  0x8f   : > { %1014 = vmatprep.subr.mxu0 %v1318_v10 }
  0x90   : > { %1015 = vmatpush3.msra.mxu0 %v1318_v10 }
  0x91   : > { %1016 = vmatprep.subr.mxu0 %v1318_v10 }
  0x92   : > { %1017 = vmatpush3.msra.mxu0 %v1318_v10 }
  0x93   : > { %1018 = vmatprep.subr.mxu0 %v1318_v10 }
  0x94   : > { %1019 = vmatpush3.msra.mxu0 %v1318_v10 }
  0x95   : > { %1020 = vmatprep.subr.mxu0 %v1318_v10 }
  0x96   : > { %1021 = vmatpush3.msra.mxu0 %v1318_v10 }
  0xd7   : > { %v425_v34 = vpop.xlane.xlu1 %424 }
  0xd8   : > { %vm426_vm0 = vcmp.eq.f32.partialorder %v1481_v0, %v425_v34  ;;  %vm427_vm1 = vcmp.eq.f32.partialorder %v1483_v1, %v425_v34  ;;  %v415_v35 = vpop.xlane.xlu0 %414 }
  0xd9   : > { %vm416_vm2 = vcmp.eq.f32.partialorder %v1485_v2, %v415_v35  ;;  %vm417_vm3 = vcmp.eq.f32.partialorder %v1489_v4, %v415_v35  ;;  %v428_v36 = vsel %vm426_vm0, %v411_v32, 256.0  ;;  %v429_v37 = vsel %vm427_vm1, %v412_v33, 256.0 }
  0xda   : > { %v430_v38 = vmin.f32 %v428_v36, %v429_v37  ;;  %v418_v39 = vsel %vm416_vm2, %v411_v32, 256.0  ;;  %v419_v40 = vsel %vm417_vm3, %v412_v33, 256.0 }
  0xdb   : > { %v420_v41 = vmin.f32 %v418_v39, %v419_v40 }
  0xdc   : > { %431 = vmin.xlane.f32.xlu1 %v430_v38 }
  0xdd   : > { %421 = vmin.xlane.f32.xlu0 %v420_v41 }
 0x137   : > { %v952_v46 = vpop.f32.mrf.mxu0 }
 0x139   : > { %v953_v47 = vpop.f32.mrf.mxu0 }
 0x13a   : > { %v954_v48 = vadd.f32 %v953_v47, %v952_v46 }
 0x13c   : > { %v399_v49 = vsel %vm306_vm5, %v954_v48, 0.0 }
 0x13d   : > { %v401_v50 = vsel %vm400_vm6, %v399_v49, 0.0 }
 0x13e   : > { %v402_v51 = vrot.slane %v401_v50, 4 }
 0x140   : > { %v403_v52 = vadd.f32 %v402_v51, %v401_v50 }
 0x142   : > { %v404_v53 = vrot.slane %v403_v52, 2 }
 0x144   : > { %v405_v54 = vadd.f32 %v404_v53, %v403_v52 }
 0x146   : > { %v406_v55 = vrot.slane %v405_v54, 1 }
 0x148   : > { %v407_v57 = vadd.f32 %v406_v55, %v405_v54 }
 0x14a   : > { %v700_v58 = vadd.f32 %v699_v56, %v407_v57 }
 0x14c   : > { %702 = vst.msk [vmem:[#allocation2] sm:$0x1] %vm288_vm4, %v700_v58 }
 0x165   : > { %v432_v8 = vpop.xlane.xlu1 %431 }
 0x166   : > { %v1621_v59 = vpop.xlane.xlu0 %421  ;;  %v438_v9 = vmul.f32 0.0625, %v432_v8 }
 0x167   : > { %vm446_vm7 = vcmp.eq.f32.partialorder %v411_v32, %v1621_v59  ;;  %vm447_vm8 = vcmp.eq.f32.partialorder %v412_v33, %v1621_v59  ;;  %v434_v11 = vmul.f32 0.0625, %v1621_v59 }
 0x168   : > { %v907_v2 = vsel %vm447_vm8, 1.0, %v1319_v42  ;;  %v906_v3 = vsel %vm446_vm7, 1.0, %v1319_v42  ;;  %v439_v12 = vfloor.f32 %v438_v9 }
 0x169   : > { %v453_v4 = vmul.f32 %v907_v2, %v297_v60  ;;  %v525_v5 = vmul.f32 %v907_v2, %v299_v61  ;;  %v452_v6 = vmul.f32 %v906_v3, %v296_v62  ;;  %v524_v7 = vmul.f32 %v906_v3, %v298_v63  ;;  %v910_v3 = vld [vmem:[#allocation2] ss:$0 sm:$0xff] }
 0x16a   : > { %v435_v13 = vfloor.f32 %v434_v11  ;;  %v440_v14 = vmul.f32 16.0, %v439_v12 }
 0x16b   : > { %518 = vmatprep.mubr.f32.mxu1 %v453_v4  ;;  %590 = vmatprep.mubr.f32.mxu0 %v525_v5 }
 0x16c   : > { %519 = vmatmul.mubr.f32.vlgmr.msra.gmra.mxu1 %v452_v6  ;;  %591 = vmatmul.mubr.f32.vlgmr.msra.gmra.mxu0 %v524_v7  ;;  %v436_v15 = vmul.f32 16.0, %v435_v13  ;;  %v441_v18 = vsub.f32 %v432_v8, %v440_v14 }
 0x16d   : > { %1026 = vmatpush3.msra.mxu1 %v1318_v10  ;;  %660 = vmatprep.mubr.f32.mxu1 %v1483_v1  ;;  %v1320_v1 = vmov 0  }
 0x16e   : > { %1027 = vmatprep.subr.mxu1 %v1318_v10  ;;  %1136 = vset.pattern.permute.xlu1 %v1320_v1  ;;  %v437_v19 = vsub.f32 %v1621_v59, %v436_v15  ;;  %v706_v59 = vld [vmem:[#allocation4] sm:$0x1] }
 0x16f   : > { %1028 = vmatpush3.msra.mxu1 %v1318_v10  ;;  %1135 = vset.pattern.permute.xlu0 %v1320_v1 }
 0x170   : > { %1029 = vmatprep.subr.mxu1 %v1318_v10  ;;  %v442_v21 = vsub.f32 %v441_v18, %v437_v19 }
 0x171   : > { %1030 = vmatpush3.msra.mxu1 %v1318_v10 }
 0x172   : > { %1031 = vmatprep.subr.mxu1 %v1318_v10  ;;  %v443_v24 = vmul.f32 8.0, %v442_v21 }
 0x173   : > { %1032 = vmatpush3.msra.mxu1 %v1318_v10 }
 0x174   : > { %1033 = vmatprep.subr.mxu1 %v1318_v10 }
 0x175   : > { %1034 = vmatpush3.msra.mxu1 %v1318_v10 }
 0x176   : > { %1035 = vmatprep.subr.mxu1 %v1318_v10 }
 0x177   : > { %1036 = vmatpush3.msra.mxu1 %v1318_v10 }
 0x178   : > { %1037 = vmatprep.subr.mxu1 %v1318_v10 }
 0x179   : > { %1038 = vmatpush3.msra.mxu1 %v1318_v10 }
 0x17a   : > { %1039 = vmatprep.subr.mxu1 %v1318_v10 }
 0x17b   : > { %1040 = vmatpush3.msra.mxu1 %v1318_v10 }
 0x17c   : > { %1041 = vmatprep.subr.mxu1 %v1318_v10 }
 0x17d   : > { %1042 = vmatpush3.msra.mxu1 %v1318_v10 }
 0x17e   : > { %1043 = vmatprep.subr.mxu1 %v1318_v10 }
 0x17f   : > { %1044 = vmatpush3.msra.mxu1 %v1318_v10 }
 0x180   : > { %1045 = vmatprep.subr.mxu1 %v1318_v10 }
 0x181   : > { %1046 = vmatpush3.msra.mxu1 %v1318_v10 }
 0x182   : > { %1047 = vmatprep.subr.mxu1 %v1318_v10 }
 0x183   : > { %1048 = vmatpush3.msra.mxu1 %v1318_v10 }
 0x184   : > { %1049 = vmatprep.subr.mxu1 %v1318_v10 }
 0x185   : > { %1050 = vmatpush3.msra.mxu1 %v1318_v10 }
 0x186   : > { %1051 = vmatprep.subr.mxu1 %v1318_v10 }
 0x187   : > { %1052 = vmatpush3.msra.mxu1 %v1318_v10 }
 0x188   : > { %1053 = vmatprep.subr.mxu1 %v1318_v10 }
 0x189   : > { %1054 = vmatpush3.msra.mxu1 %v1318_v10 }
 0x18a   : > { %1055 = vmatprep.subr.mxu1 %v1318_v10 }
 0x18b   : > { %1056 = vmatpush3.msra.mxu1 %v1318_v10 }
 0x18c   : > { %661 = vmatmul.mubr.f32.vlgmr.msra.gmra.mxu1 %v1481_v0  ;;  %v444_v0 = vsub.f32 %v439_v12, %v435_v13 }
 0x18e   : > { %v445_v25 = vmul.f32 8.0, %v444_v0 }
 0x22c   : > { %v987_v16 = vpop.f32.mrf.mxu1  ;;  %v1022_v17 = vpop.f32.mrf.mxu0 }
 0x22e   : > { %v988_v20 = vpop.f32.mrf.mxu1  ;;  %v1023_v10 = vpop.f32.mrf.mxu0 }
 0x22f   : > { %v989_v22 = vadd.f32 %v988_v20, %v987_v16  ;;  %v1024_v23 = vadd.f32 %v1023_v10, %v1022_v17 }
 0x231   : > { %v668_v26 = vsub.f32 %v989_v22, %v443_v24  ;;  %v675_v27 = vsub.f32 %v1024_v23, %v445_v25 }
 0x233   : > { %v669_v28 = vand.u32 2147483647, %v668_v26  ;;  %v671_v29 = vmul.f32 0.5, %v668_v26  ;;  %v676_v31 = vand.u32 2147483647, %v675_v27  ;;  %v678_v32 = vmul.f32 0.5, %v675_v27 }
 0x235   : > { %v672_v33 = vmul.f32 %v671_v29, %v668_v26  ;;  %v908_v34 = vadd.f32 -0.5, %v669_v28  ;;  %v679_v35 = vmul.f32 %v678_v32, %v675_v27  ;;  %v909_v36 = vadd.f32 -0.5, %v676_v31 }
 0x236   : > { %vm670_vm9 = vcmp.lt.f32.partialorder %v669_v28, 1.0  ;;  %vm677_vm10 = vcmp.lt.f32.partialorder %v676_v31, 1.0 }
 0x237   : > { %v674_v39 = vsel %vm670_vm9, %v672_v33, %v908_v34  ;;  %v681_v40 = vsel %vm677_vm10, %v679_v35, %v909_v36 }
 0x238   : > { %v682_v43 = vadd.f32 %v681_v40, %v674_v39 }
 0x24c   : > { %v1057_v37 = vpop.f32.mrf.mxu1 }
 0x24e   : > { %v1058_v38 = vpop.f32.mrf.mxu1 }
 0x24f   : > { %v1059_v41 = vadd.f32 %v1058_v38, %v1057_v37 }
 0x251   : > { %vm666_vm11 = vcmp.gt.f32.partialorder %v1059_v41, 0.0 }
 0x252   : > { %vm667_vm12 = vmand %vm306_vm5, %vm666_vm11 }
 0x253   : > { %v683_v44 = vsel %vm667_vm12, %v682_v43, 0.0  ;;  %v691_v46 = vsel %vm667_vm12, 2.0, %v1319_v42 }
 0x254   : > { %v684_v47 = vsel %vm400_vm6, %v683_v44, 0.0  ;;  %v692_v48 = vsel %vm400_vm6, %v691_v46, 0.0 }
 0x255   : > { %v685_v49 = vrot.slane %v684_v47, 4  ;;  %v693_v50 = vrot.slane %v692_v48, 4 }
 0x257   : > { %v686_v51 = vadd.f32 %v685_v49, %v684_v47  ;;  %v694_v52 = vadd.f32 %v693_v50, %v692_v48 }
 0x259   : > { %v687_v53 = vrot.slane %v686_v51, 2  ;;  %v695_v54 = vrot.slane %v694_v52, 2 }
 0x25b   : > { %v688_v55 = vadd.f32 %v687_v53, %v686_v51  ;;  %v696_v56 = vadd.f32 %v695_v54, %v694_v52 }
 0x25d   : > { %v689_v57 = vrot.slane %v688_v55, 1  ;;  %v697_v58 = vrot.slane %v696_v56, 1 }
 0x25f   : > { %v690_v60 = vadd.f32 %v689_v57, %v688_v55  ;;  %v698_v61 = vadd.f32 %v697_v58, %v696_v56 }
 0x261   : > { %v704_v42 = vadd.f32 %v703_v45, %v690_v60  ;;  %v707_v62 = vadd.f32 %v706_v59, %v698_v61 }
 0x263   : > { %705 = vst.msk [vmem:[#allocation3] sm:$0x1] %vm288_vm4, %v704_v42  ;;  %708 = vst.msk [vmem:[#allocation4] sm:$0x1] %vm288_vm4, %v707_v62 }
 0x26a   : > { %v912_v63 = vld [vmem:[#allocation4] ss:$0 sm:$0xff]  ;;  %v911_v2 = vld [vmem:[#allocation3] ss:$0 sm:$0xff] }
 0x26b   : > { %739 = vperm.xlu0 %1135, %v912_v63   ;;  %729 = vperm.xlu1 %1136, %v911_v2  }
 0x26f   : > { %719 = vperm.xlu1 %1136, %v910_v3  }
 0x2e6   : > { %v740_v4 = vpop.permute.xlu0 %739  ;;  %v730_v5 = vpop.permute.xlu1 %729 }
 0x2e7   : > { %v745_v6 = vsel %vm744_vm13, %v740_v4, 0.0 }
 0x2e8   : > { %v746_v7 = vsel %vm743_vm14, %v730_v5, %v745_v6 }
 0x2ea   : > { %v720_v1 = vpop.permute.xlu1 %719 }
 0x2eb   : > { %v747_v8 = vsel %vm742_vm15, %v720_v1, %v746_v7 }
 0x2ec   : > { %748 = vst [vmem:[%s280_s6] sm:$0xff] %v747_v8 }
 0x2ed   : > { %1242 = shalt.err (!%p1239_p12)
}
 0x2ee   : > { %s1243_s23 = scalar_lea.hbm %s1677_s1, 128  ;;  %s1247_s11 = scalar_lea.hbm %s1722_s3, 256 }
 0x2ef   : > { %p1244_p5 = scmp.ne.s32.totalorder %s1677_s1, %s1243_s23  ;;  %p1248_p2 = scmp.lt.s32.totalorder %s1677_s1, %s1722_s3 }
 0x2f0   : > { %p1249_p7 = scmp.lt.s32.totalorder %s1247_s11, %s1243_s23 }
 0x2f1   : > { %p1245_p6 = pnand %p1244_p5, %p1397_p9 }
 0x2f2   : > { %p1250_p8 = por %p1249_p7, %p1248_p2 }
 0x2f3   : > { %p1246_p1 = pneg %p1245_p6 }
 0x2f5   : > { %p1251_p0 = pnand %p1250_p8, %p1246_p1 }
 0x2f7   : > { %1254 = shalt.err (!%p1251_p0)
}
 0x2f8   : > { %1066 = dma.vmem_to_hbm [thread:$0]  (%p1397_p9), %s764_s7, 128, %s1677_s1, %s750_s20  }
 0x2f9 PF: > { %s775_s24 = sand.u32 1, %s1293_s12   ;;  %p1733_p3 = scmp.ge.s32.totalorder %s1313_s17, 2 }
 0x2fa   : > { %s776_s28 = scalar_lea.sflag [#allocation7], %s775_s24 }
 0x2fb   : > { %p1079_p4 = pnand %p1733_p3, %p1404_p11 }
 0x2fd   : > { %p1080_p10 = pneg %p1079_p4 }
 0x2ff   : > { %1288 = dma.done.wait (%p1080_p10), %s776_s28, 128  }
 0x300   : > { %1290 = vsyncadd (%p1080_p10), %s776_s28, 4294967168  ;;  %s22_s17 = sadd.s32 1, %s1313_s17   ;;  %s1734_s25 = sld [smem:[#allocation15_spill]] }
 0x301   : > { %p19_p13 = scmp.ge.s32.totalorder %s22_s17, 4   ;;  %s1735_s12 = smov %s1297_s13 }
 0x302   : > { %s1736_s13 = smov %s1301_s14  ;;  %s1737_s14 = smov %s1402_s26 }
 0x303   : > { %s1738_s15 = smov %s1309_s16  ;;  %21 = sbr.rel (!%p19_p13) target bundleno = 10 (0xa), region = 109 }
 0x306   : > { %s1739_s16 = smov %s1734_s25 }
 0x308   :  { %781 = vsyncpa [#allocation6], 1 }
 0x309   :  { %783 = vsyncpa [#allocation6 + $0x1], 1 }
 0x30a   :  { %784 = vsyncpa [#allocation9], 1 }
 0x30b   :  { %786 = vsyncpa [#allocation9 + $0x1], 1 }
 0x30c   :  { %787 = vsyncpa [#allocation7], 1 }
 0x30d   :  { %789 = vsyncpa [#allocation7 + $0x1], 1 }

</bundles_post_ra>
